<compile_context>
chip_gen: v5e
topology: v5e:2x2
jax: 0.10.0
libtpu: 0.0.40
codegen_flags: <defaults>
</compile_context>

<pallas_src>
import functools

import jax
import jax.numpy as jnp
from jax import lax
from jax.experimental import pallas as pl
from jax.experimental.pallas import tpu as pltpu

LANE = 128  # TPU lane width (last-dim vreg tiling)


def _ceil_to(x, m):
    return -(-x // m) * m


def cls_head_kernel(cls_ref, w_ref, b_ref, out_ref, *, dot_precision):
    """One batch tile: softmax(cls @ W_comb + b_comb)."""
    # Cast the activation tile to the (possibly bf16) weight dtype right at the
    # MXU input; this is cheap VPU work fully hidden under the DMA stream.
    a = cls_ref[...].astype(w_ref.dtype)
    logits = jnp.dot(a, w_ref[...], preferred_element_type=jnp.float32,
                     precision=dot_precision)
    logits = logits + b_ref[...]  # f32 bias; padded class lanes carry -1e30

    # Softmax(dim=1). Padded columns have logit -1e30 -> exp() underflows to 0,
    # so neither the max nor the sum is perturbed.
    m = jnp.max(logits, axis=-1, keepdims=True)
    e = jnp.exp(logits - m)
    denom = jnp.sum(e, axis=-1, keepdims=True)
    # Exact normalization: rows sum to 1 up to f32 rounding (the previous
    # approx reciprocal violated the 1e-3 sum-to-one tolerance).
    out_ref[...] = (e / denom).astype(out_ref.dtype)


def _choose_batch_tile(batch, hidden, itemsize, batch_tile):
    """Sublane-aligned batch tile, budgeted against scoped-VMEM defaults."""
    sub = 16 if itemsize < 4 else 8  # bf16 packs 16 rows per sublane tile
    # The double-buffered activation stream (2 * tb * H * itemsize) dominates
    # VMEM use; keep it under ~8 MiB so the kernel fits v5e's 16 MiB scoped
    # default and leaves ample headroom on v7x (64 MiB physical / 32 MiB scoped).
    cls_budget = 8 * 1024 * 1024
    cap = max(sub, cls_budget // (2 * hidden * itemsize))
    tb = max(sub, (min(batch_tile, cap) // sub) * sub)
    if batch > sub:
        # v7x has 2 TensorCores: make sure the "parallel" grid has >= 2 steps.
        half = _ceil_to((batch + 1) // 2, sub)
        tb = min(tb, half)
    if tb >= batch:
        tb = batch  # single block spanning the full (possibly unaligned) batch
    return tb


def transformer_cls_forward(last_hidden_state, params, num_classes, *,
                            batch_tile=512, compute_dtype=jnp.bfloat16):
    """Forward pass of the classification head on top of last_hidden_state."""
    B, S, H = last_hidden_state.shape
    w1, b1, w2, b2, w3, b3 = params  # PyTorch nn.Linear layout: (out, in)

    hi = lax.Precision.HIGHEST
    # Dropout(0.5) is the identity in eval mode and there is no nonlinearity
    # between the Linears, so collapse them into one exact affine map:
    #   y = ((x W1^T + b1) W2^T + b2) W3^T + b3
    #     = x @ (W1^T W2^T W3^T) + ((b1 W2^T + b2) W3^T + b3)
    # Done in f32 at HIGHEST precision (tiny matrices) for PyTorch parity.
    w_comb = jnp.dot(jnp.dot(w1.T, w2.T, precision=hi), w3.T, precision=hi)  # (H, C)
    b_comb = jnp.dot(jnp.dot(b1, w2.T, precision=hi) + b2, w3.T,
                     precision=hi) + b3                                      # (C,)

    # Lane-dense class padding (Cp == 128 for any realistic class count; do NOT
    # pad to 256 — the kernel is HBM-bound, wider tiles only add bytes).
    Cp = _ceil_to(num_classes, LANE)
    w_pad = jnp.zeros((H, Cp), compute_dtype).at[:, :num_classes].set(
        w_comb.astype(compute_dtype))
    # Bias (and the -1e30 sentinel for padded lanes) stays f32 and is added
    # after the f32 accumulation — never folded into a bf16 weight column.
    b_pad = jnp.full((1, Cp), -1e30, jnp.float32).at[:, :num_classes].set(b_comb)

    fused_gather = (H % LANE == 0)
    if fused_gather:
        # Fused CLS gather: flat (B, S*H) view (contiguous, free reshape); each
        # batch tile's DMA reads only the first H lanes of each row == token 0.
        x = last_hidden_state.reshape(B, S * H)
    else:
        # TODO(synk): for H % 128 != 0 the BlockSpec DMA cannot express the
        # gather; fall back to an XLA slice (cast to the compute dtype so the
        # materialized slice round-trips half the bytes).
        x = last_hidden_state[:, 0, :].astype(compute_dtype)

    itemsize = jnp.dtype(x.dtype).itemsize
    tb = _choose_batch_tile(B, H, itemsize, batch_tile)
    grid = (pl.cdiv(B, tb),)

    dot_precision = (hi if jnp.dtype(compute_dtype) == jnp.float32
                     else lax.Precision.DEFAULT)
    kernel = functools.partial(cls_head_kernel, dot_precision=dot_precision)

    out = pl.pallas_call(
        kernel,
        out_shape=jax.ShapeDtypeStruct((B, Cp), jnp.float32),
        grid=grid,
        in_specs=[
            # CLS activations: tiled over batch; ragged last block is fine
            # (garbage rows never reach the (B, Cp) output).
            pl.BlockSpec((tb, H), lambda i: (i, 0)),
            # Combined weight / bias are pinned (constant index_map) -> fetched
            # once; single-buffered to free VMEM headroom (matters on v7x).
            pl.BlockSpec((H, Cp), lambda i: (0, 0), pipeline_mode=pl.Buffered(1)),
            pl.BlockSpec((1, Cp), lambda i: (0, 0), pipeline_mode=pl.Buffered(1)),
        ],
        out_specs=pl.BlockSpec((tb, Cp), lambda i: (i, 0)),
        compiler_params=pltpu.CompilerParams(
            dimension_semantics=("parallel",)),
    )(x, w_pad, b_pad)

    # Strip the lane padding only; there is no batch padding to strip.
    return out[:, :num_classes]


def init_params(key, hidden_size, num_classes):
    """Deterministic init matching the PyTorch __init__ shapes."""
    ks = jax.random.split(key, 6)

    def linear_init(kw, kb, fan_in, fan_out):
        bound = 1.0 / jnp.sqrt(fan_in)
        w = jax.random.uniform(kw, (fan_out, fan_in), jnp.float32, -bound, bound)
        b = jax.random.uniform(kb, (fan_out,), jnp.float32, -bound, bound)
        return w, b

    w1, b1 = linear_init(ks[0], ks[1], hidden_size, 192)
    w2, b2 = linear_init(ks[2], ks[3], 192, 24)
    w3, b3 = linear_init(ks[4], ks[5], 24, num_classes)
    return (w1, b1, w2, b2, w3, b3)


def reference_head(last_hidden_state, params):
    """Pure-JAX reference of the un-collapsed PyTorch head (f32, eval mode)."""
    w1, b1, w2, b2, w3, b3 = params
    hi = lax.Precision.HIGHEST
    cls = last_hidden_state[:, 0, :]
    h1 = jnp.dot(cls, w1.T, precision=hi) + b1
    h2 = jnp.dot(h1, w2.T, precision=hi) + b2
    logits = jnp.dot(h2, w3.T, precision=hi) + b3
    return jax.nn.softmax(logits, axis=1)


if __name__ == "__main__":
    key = jax.random.PRNGKey(0)
    k_x, k_p, k_x2, k_p2, k_x3 = jax.random.split(key, 5)

    # ---- Config A: lane-aligned hidden size -> fused CLS-gather path --------
    B, S, H, C = 6, 8, 128, 4
    last_hidden_state = jax.random.normal(k_x, (B, S, H), dtype=jnp.float32)
    params = init_params(k_p, H, C)
    ref = reference_head(last_hidden_state, params)

    # f32 compute path: exact parity with the PyTorch float32 head.
    out_f32 = jax.block_until_ready(
        transformer_cls_forward(last_hidden_state, params, C,
                                compute_dtype=jnp.float32))
    assert out_f32.shape == (B, C)
    assert jnp.allclose(out_f32, ref, atol=1e-3, rtol=1e-3)
    assert jnp.allclose(jnp.sum(out_f32, axis=1), 1.0, atol=1e-3)

    # Default bf16 compute path (HBM-bandwidth optimization): same predictions
    # up to bf16 input rounding; rows still sum to 1 exactly (exact division).
    out_bf16 = jax.block_until_ready(
        transformer_cls_forward(last_hidden_state, params, C))
    assert out_bf16.shape == (B, C)
    assert jnp.allclose(out_bf16, ref, atol=2e-2, rtol=2e-2)
    assert jnp.allclose(jnp.sum(out_bf16, axis=1), 1.0, atol=1e-3)

    # Multi-step grid with a ragged last batch block (no padding copies).
    B3 = 20
    lhs3 = jax.random.normal(k_x3, (B3, S, H), dtype=jnp.float32)
    ref3 = reference_head(lhs3, params)
    out3 = jax.block_until_ready(
        transformer_cls_forward(lhs3, params, C, batch_tile=16))
    assert out3.shape == (B3, C)
    assert jnp.allclose(out3, ref3, atol=2e-2, rtol=2e-2)
    assert jnp.allclose(jnp.sum(out3, axis=1), 1.0, atol=1e-3)

    # ---- Config B: H not a multiple of 128 -> wrapper-slice fallback --------
    B2, S2, H2, C2 = 2, 8, 32, 4
    lhs2 = jax.random.normal(k_x2, (B2, S2, H2), dtype=jnp.float32)
    params2 = init_params(k_p2, H2, C2)
    ref2 = reference_head(lhs2, params2)
    out2 = jax.block_until_ready(
        transformer_cls_forward(lhs2, params2, C2, compute_dtype=jnp.float32))
    assert out2.shape == (B2, C2)
    assert jnp.allclose(out2, ref2, atol=1e-3, rtol=1e-3)
    assert jnp.allclose(jnp.sum(out2, axis=1), 1.0, atol=1e-3)

    print("KERNEL_OK")
</pallas_src>

<mosaic_0001>
module attributes {stable_mosaic.version = 11 : i64} {
  func.func @cls_head_kernel(%arg0: i32, %arg1: memref<6x128xf32, #tpu.memory_space<vmem>>, %arg2: memref<128x128xf32, #tpu.memory_space<vmem>>, %arg3: memref<1x128xf32, #tpu.memory_space<vmem>>, %arg4: memref<6x128xf32, #tpu.memory_space<vmem>>) attributes {dimension_semantics = [#tpu.dimension_semantics<parallel>], iteration_bounds = array<i64: 1>, scalar_prefetch = 0 : i64, scratch_operands = 0 : i64, tpu.core_type = #tpu.core_type<tc>, window_params = [{transform_indices = @transform_0, window_bounds = array<i64: 6, 128>}, {pipeline_mode = #tpu.pipeline_mode<synchronous>, transform_indices = @transform_1, window_bounds = array<i64: 128, 128>}, {pipeline_mode = #tpu.pipeline_mode<synchronous>, transform_indices = @transform_2, window_bounds = array<i64: 1, 128>}, {transform_indices = @transform_3, window_bounds = array<i64: 6, 128>}]} {
    %c0 = arith.constant 0 : index
    %c0_0 = arith.constant 0 : index
    %0 = vector.load %arg1[%c0, %c0_0] : memref<6x128xf32, #tpu.memory_space<vmem>>, vector<6x128xf32>
    %c0_1 = arith.constant 0 : index
    %c0_2 = arith.constant 0 : index
    %1 = vector.load %arg2[%c0_1, %c0_2] : memref<128x128xf32, #tpu.memory_space<vmem>>, vector<128x128xf32>
    %cst = arith.constant dense<0.000000e+00> : vector<6x128xf32>
    %2 = tpu.matmul %0, %1, %cst {dimension_numbers = #tpu.dot_dimension_numbers<[1], [0], [0], [1], [0, 0, 1, 1], [], []>, precision = #tpu.contract_precision<fp32>} : vector<6x128xf32>, vector<128x128xf32>, vector<6x128xf32> -> vector<6x128xf32>
    %c0_3 = arith.constant 0 : index
    %c0_4 = arith.constant 0 : index
    %3 = vector.load %arg3[%c0_3, %c0_4] : memref<1x128xf32, #tpu.memory_space<vmem>>, vector<1x128xf32>
    %4 = vector.broadcast %3 : vector<1x128xf32> to vector<6x128xf32>
    %5 = arith.addf %2, %4 : vector<6x128xf32>
    %cst_5 = arith.constant dense<0xFF800000> : vector<6xf32>
    %6 = vector.multi_reduction <maximumf>, %5, %cst_5 [1] : vector<6x128xf32> to vector<6xf32>
    %7 = vector.shape_cast %6 : vector<6xf32> to vector<6x1xf32>
    %8 = vector.broadcast %7 : vector<6x1xf32> to vector<6x128xf32>
    %9 = arith.subf %5, %8 : vector<6x128xf32>
    %10 = math.exp %9 : vector<6x128xf32>
    %cst_6 = arith.constant dense<0.000000e+00> : vector<6xf32>
    %11 = vector.multi_reduction <add>, %10, %cst_6 [1] : vector<6x128xf32> to vector<6xf32>
    %12 = vector.shape_cast %11 : vector<6xf32> to vector<6x1xf32>
    %13 = vector.broadcast %12 : vector<6x1xf32> to vector<6x128xf32>
    %14 = arith.divf %10, %13 : vector<6x128xf32>
    %c0_7 = arith.constant 0 : index
    %c0_8 = arith.constant 0 : index
    %15 = vector.load %arg4[%c0_7, %c0_8] : memref<6x128xf32, #tpu.memory_space<vmem>>, vector<6x128xf32>
    tpu.vector_store %arg4[%c0_7, %c0_8], %14 {strides = array<i32>} : memref<6x128xf32, #tpu.memory_space<vmem>>, vector<6x128xf32>,
    return
  }
  func.func @transform_0(%arg0: i32) -> (i32, i32) {
    %c0_i32 = arith.constant 0 : i32
    %c0_i32_0 = arith.constant 0 : i32
    return %arg0, %c0_i32 : i32, i32
  }
  func.func @transform_1(%arg0: i32) -> (i32, i32) {
    %c0_i32 = arith.constant 0 : i32
    %c0_i32_0 = arith.constant 0 : i32
    %c0_i32_1 = arith.constant 0 : i32
    return %c0_i32, %c0_i32_0 : i32, i32
  }
  func.func @transform_2(%arg0: i32) -> (i32, i32) {
    %c0_i32 = arith.constant 0 : i32
    %c0_i32_0 = arith.constant 0 : i32
    %c0_i32_1 = arith.constant 0 : i32
    return %c0_i32, %c0_i32_0 : i32, i32
  }
  func.func @transform_3(%arg0: i32) -> (i32, i32) {
    %c0_i32 = arith.constant 0 : i32
    %c0_i32_0 = arith.constant 0 : i32
    return %arg0, %c0_i32 : i32, i32
  }
}

</mosaic_0001>

<bundles_post_ra>
// kernel: tpu_custom_call.1
= control target key start
LH: loop header
LB: loop body
LE: loop exit
PB: predicated region body
PF: predicated region fallthrough
CT: control target
= control target key end

     0   :  { %8 = vsyncpa [#allocation3], 0  ;;  %s814_s0 = inlined_call_operand.hbm [shape: f32[6,1024], index: 0, kind: input, shape index: {}]   ;;  %s815_s1 = inlined_call_operand.hbm [shape: f32[128,128], index: 1, kind: input, shape index: {}]   ;;  %s816_s2 = inlined_call_operand.vmem [shape: f32[1,128], index: 2, kind: input, shape index: {}]   ;;  %s817_s3 = inlined_call_operand.hbm [shape: f32[6,128], index: 3, kind: output, shape index: {}]  }
   0x1   :  { %9 = vsyncpa [#allocation6], 0 }
   0x2   :  { %10 = vsyncpa [#allocation4], 0  ;;  %s16_s14 = sshll.u32 %s814_s0, 4  ;;  %s539_s15 = smov [#allocation2]   ;;  %s17_s14 = int_to_ptr.hbm [resolvable:$true] %s16_s14 }
   0x3   :  { %s18_s16 = sshll.u32 %s539_s15, 4  ;;  %s26_s19 = sshll.u32 %s815_s1, 4  ;;  %s19_s16 = int_to_ptr.vmem [resolvable:$true] %s18_s16  ;;  %s27_s19 = int_to_ptr.hbm [resolvable:$true] %s26_s19 }
   0x4   :  { %21 = dma.hbm_to_vmem [thread:$0]  %s17_s14, 128, %s19_s16, [#allocation3]  }
   0x5   :  { %s540_s20 = smov [#allocation5]   ;;  %s541_s22 = smov 128  }
   0x6   :  { %s28_s21 = sshll.u32 %s540_s20, 4  ;;  %s542_s23 = smov 8   ;;  %s29_s21 = int_to_ptr.vmem [resolvable:$true] %s28_s21 }
   0x7   :  { %34 = dma.hbm_to_vmem [thread:$0]  %s27_s19, 2048, %s29_s21, [#allocation6], %s541_s22, %s541_s22, %s542_s23  }
   0x8   :  { %533 = dma.done.wait [#allocation3], 128  }
   0x9   :  { %534 = vsyncadd [#allocation3], 4294967168 }
   0xa   :  { %535 = dma.done.wait [#allocation6], 2048  }
   0xb   :  { %536 = vsyncadd [#allocation6], 4294965248  ;;  %v61_v0 = vld [vmem:[#allocation5 + $0x78] sm:$0xff]  ;;  %v60_v1 = vld [vmem:[#allocation5 + $0x70] sm:$0xff]  ;;  %vm407_vm0 = vcmask 1045504   ;;  %s440_s27 = sshll.u32 %s817_s3, 4  ;;  %s441_s27 = int_to_ptr.hbm [resolvable:$true] %s440_s27 }
   0xc   :  { %v59_v2 = vld [vmem:[#allocation5 + $0x68] sm:$0xff]  ;;  %v570_v3 = vand.u32 4294901760, %v61_v0  ;;  %v572_v4 = vand.u32 4294901760, %v60_v1  ;;  %v58_v6 = vld [vmem:[#allocation5 + $0x60] sm:$0xff]  ;;  %v57_v7 = vld [vmem:[#allocation5 + $0x58] sm:$0xff] }
   0xd   :  { %v574_v5 = vand.u32 4294901760, %v59_v2  ;;  %v56_v8 = vld [vmem:[#allocation5 + $0x50] sm:$0xff]  ;;  %v576_v9 = vand.u32 4294901760, %v58_v6  ;;  %v578_v10 = vand.u32 4294901760, %v57_v7  ;;  %v55_v12 = vld [vmem:[#allocation5 + $0x48] sm:$0xff]  ;;  %v54_v13 = vld [vmem:[#allocation5 + $0x40] sm:$0xff] }
   0xe   :  { %v580_v11 = vand.u32 4294901760, %v56_v8  ;;  %67 = vmatpush.msra.mxu0 %v570_v3  ;;  %v584_v14 = vsub.f32 %v61_v0, %v570_v3  ;;  %v587_v15 = vsub.f32 %v60_v1, %v572_v4  ;;  %v592_v17 = vand.u32 4294901760, %v55_v12  ;;  %263 = vmatpush.msra.mxu3 %v570_v3  ;;  %v53_v21 = vld [vmem:[#allocation5 + $0x38] sm:$0xff]  ;;  %v52_v34 = vld [vmem:[#allocation5 + $0x30] sm:$0xff]  ;;  %v51_v35 = vld [vmem:[#allocation5 + $0x28] sm:$0xff] }
   0xf   :  { %v590_v16 = vsub.f32 %v59_v2, %v574_v5  ;;  %v596_v18 = vsub.f32 %v58_v6, %v576_v9  ;;  %v599_v19 = vsub.f32 %v57_v7, %v578_v10  ;;  %v601_v20 = vand.u32 4294901760, %v54_v13  ;;  %v50_v42 = vld [vmem:[#allocation5 + $0x20] sm:$0xff]  ;;  %v49_v47 = vld [vmem:[#allocation5 + $0x18] sm:$0xff]  ;;  %v48_v53 = vld [vmem:[#allocation5 + $0x10] sm:$0xff] }
  0x10   :  { %69 = vmatpush.msra.mxu0 %v572_v4  ;;  %v109_v22 = vand.u32 4294901760, %v584_v14  ;;  %v115_v23 = vand.u32 4294901760, %v587_v15  ;;  %v608_v25 = vsub.f32 %v56_v8, %v580_v11  ;;  %210 = vmatpush.msra.mxu2 %v584_v14  ;;  %v614_v28 = vsub.f32 %v55_v12, %v592_v17  ;;  %v47_v61 = vld [vmem:[#allocation5 + $0x8] sm:$0xff]  ;;  %v46_v2 = vld [vmem:[#allocation5] sm:$0xff] }
  0x11   :  { %v121_v24 = vand.u32 4294901760, %v590_v16  ;;  %v127_v26 = vand.u32 4294901760, %v596_v18  ;;  %v133_v27 = vand.u32 4294901760, %v599_v19  ;;  %265 = vmatpush.msra.mxu3 %v572_v4  ;;  %v627_v32 = vand.u32 4294901760, %v53_v21 }
  0x12   :  { %v110_v29 = vsub.f32 %v584_v14, %v109_v22  ;;  %71 = vmatpush.msra.mxu0 %v574_v5  ;;  %v116_v30 = vsub.f32 %v587_v15, %v115_v23  ;;  %213 = vmatpush.msra.mxu2 %v587_v15  ;;  %v631_v33 = vsub.f32 %v54_v13, %v601_v20  ;;  %v139_v39 = vand.u32 4294901760, %v608_v25 }
  0x13   :  { %v122_v31 = vsub.f32 %v590_v16, %v121_v24  ;;  %267 = vmatpush.msra.mxu3 %v574_v5  ;;  %v128_v38 = vsub.f32 %v596_v18, %v127_v26  ;;  %v134_v40 = vsub.f32 %v599_v19, %v133_v27  ;;  %v145_v41 = vand.u32 4294901760, %v614_v28 }
  0x14   :  { %v111_v36 = vand.u32 4294901760, %v110_v29  ;;  %v117_v37 = vand.u32 4294901760, %v116_v30  ;;  %73 = vmatpush.msra.mxu0 %v576_v9  ;;  %216 = vmatpush.msra.mxu2 %v590_v16  ;;  %v646_v44 = vand.u32 4294901760, %v52_v34  ;;  %v649_v45 = vsub.f32 %v53_v21, %v627_v32  ;;  %v45_v29 = vld [vmem:[#allocation2] sm:$0x3f] }
  0x15   :  { %269 = vmatpush.msra.mxu3 %v576_v9  ;;  %v123_v43 = vand.u32 4294901760, %v122_v31  ;;  %v651_v46 = vand.u32 4294901760, %v51_v35  ;;  %v151_v48 = vand.u32 4294901760, %v631_v33  ;;  %v129_v49 = vand.u32 4294901760, %v128_v38 }
  0x16   :  { %112 = vmatpush.msra.mxu1 %v111_v36  ;;  %75 = vmatpush.msra.mxu0 %v578_v10  ;;  %v140_v50 = vsub.f32 %v608_v25, %v139_v39  ;;  %v661_v51 = vsub.f32 %v52_v34, %v646_v44  ;;  %v663_v52 = vand.u32 4294901760, %v50_v42  ;;  %v665_v54 = vand.u32 4294901760, %v49_v47 }
  0x17   :  { %219 = vmatpush.msra.mxu2 %v596_v18  ;;  %271 = vmatpush.msra.mxu3 %v578_v10  ;;  %v135_v55 = vand.u32 4294901760, %v134_v40  ;;  %v146_v56 = vsub.f32 %v614_v28, %v145_v41  ;;  %v157_v57 = vand.u32 4294901760, %v649_v45  ;;  %v675_v58 = vsub.f32 %v51_v35, %v651_v46 }
  0x18   :  { %118 = vmatpush.msra.mxu1 %v117_v37  ;;  %77 = vmatpush.msra.mxu0 %v580_v11  ;;  %v152_v59 = vsub.f32 %v631_v33, %v151_v48  ;;  %v680_v60 = vand.u32 4294901760, %v48_v53  ;;  %v141_v62 = vand.u32 4294901760, %v140_v50  ;;  %v163_v63 = vand.u32 4294901760, %v661_v51 }
  0x19   :  { %222 = vmatpush.msra.mxu2 %v599_v19  ;;  %273 = vmatpush.msra.mxu3 %v580_v11  ;;  %v687_v0 = vsub.f32 %v50_v42, %v663_v52  ;;  %v690_v1 = vsub.f32 %v49_v47, %v665_v54  ;;  %v147_v6 = vand.u32 4294901760, %v146_v56  ;;  %v158_v7 = vsub.f32 %v649_v45, %v157_v57 }
  0x1a   :  { %124 = vmatpush.msra.mxu1 %v123_v43  ;;  %79 = vmatpush.msra.mxu0 %v592_v17  ;;  %v169_v8 = vand.u32 4294901760, %v675_v58  ;;  %v699_v12 = vand.u32 4294901760, %v47_v61  ;;  %v153_v13 = vand.u32 4294901760, %v152_v59  ;;  %v702_v21 = vsub.f32 %v48_v53, %v680_v60 }
  0x1b   :  { %225 = vmatpush.msra.mxu2 %v608_v25  ;;  %275 = vmatpush.msra.mxu3 %v592_v17  ;;  %v164_v30 = vsub.f32 %v661_v51, %v163_v63  ;;  %v175_v31 = vand.u32 4294901760, %v687_v0  ;;  %v711_v34 = vand.u32 4294901760, %v46_v2  ;;  %v713_v35 = vand.u32 4294901760, %v45_v29 }
  0x1c   :  { %130 = vmatpush.msra.mxu1 %v129_v49  ;;  %81 = vmatpush.msra.mxu0 %v601_v20  ;;  %v181_v36 = vand.u32 4294901760, %v690_v1  ;;  %v159_v37 = vand.u32 4294901760, %v158_v7  ;;  %v170_v38 = vsub.f32 %v675_v58, %v169_v8  ;;  %v723_v40 = vsub.f32 %v47_v61, %v699_v12 }
  0x1d   :  { %228 = vmatpush.msra.mxu2 %v614_v28  ;;  %277 = vmatpush.msra.mxu3 %v601_v20  ;;  %v99_v42 = vsub.f32 %v45_v29, %v713_v35  ;;  %v165_v43 = vand.u32 4294901760, %v164_v30  ;;  %v176_v47 = vsub.f32 %v687_v0, %v175_v31  ;;  %v187_v49 = vand.u32 4294901760, %v702_v21 }
  0x1e   :  { %136 = vmatpush.msra.mxu1 %v135_v55  ;;  %83 = vmatpush.msra.mxu0 %v627_v32  ;;  %v734_v50 = vsub.f32 %v46_v2, %v711_v34  ;;  %v171_v53 = vand.u32 4294901760, %v170_v38  ;;  %v182_v55 = vsub.f32 %v690_v1, %v181_v36  ;;  %v193_v56 = vand.u32 4294901760, %v723_v40 }
  0x1f   :  { %231 = vmatpush.msra.mxu2 %v631_v33  ;;  %279 = vmatpush.msra.mxu3 %v627_v32  ;;  %v100_v59 = vand.u32 4294901760, %v99_v42  ;;  %v177_v61 = vand.u32 4294901760, %v176_v47 }
  0x20   :  { %142 = vmatpush.msra.mxu1 %v141_v62  ;;  %85 = vmatpush.msra.mxu0 %v646_v44  ;;  %v188_v62 = vsub.f32 %v702_v21, %v187_v49  ;;  %v199_v2 = vand.u32 4294901760, %v734_v50  ;;  %v194_v7 = vsub.f32 %v723_v40, %v193_v56 }
  0x21   :  { %234 = vmatpush.msra.mxu2 %v649_v45  ;;  %281 = vmatpush.msra.mxu3 %v646_v44 }
  0x22   :  { %148 = vmatpush.msra.mxu1 %v147_v6  ;;  %87 = vmatpush.msra.mxu0 %v651_v46  ;;  %v183_v6 = vand.u32 4294901760, %v182_v55  ;;  %v189_v29 = vand.u32 4294901760, %v188_v62  ;;  %v200_v30 = vsub.f32 %v734_v50, %v199_v2 }
  0x23   :  { %237 = vmatpush.msra.mxu2 %v661_v51  ;;  %283 = vmatpush.msra.mxu3 %v651_v46 }
  0x24   :  { %154 = vmatpush.msra.mxu1 %v153_v13  ;;  %89 = vmatpush.msra.mxu0 %v663_v52  ;;  %v101_v13 = vsub.f32 %v99_v42, %v100_v59 }
  0x25   :  { %240 = vmatpush.msra.mxu2 %v675_v58  ;;  %285 = vmatpush.msra.mxu3 %v663_v52 }
  0x26   :  { %160 = vmatpush.msra.mxu1 %v159_v37  ;;  %91 = vmatpush.msra.mxu0 %v665_v54  ;;  %v195_v37 = vand.u32 4294901760, %v194_v7  ;;  %v102_v38 = vand.u32 4294901760, %v101_v13 }
  0x27   :  { %243 = vmatpush.msra.mxu2 %v687_v0  ;;  %287 = vmatpush.msra.mxu3 %v665_v54 }
  0x28   :  { %166 = vmatpush.msra.mxu1 %v165_v43  ;;  %93 = vmatpush.msra.mxu0 %v680_v60  ;;  %v201_v43 = vand.u32 4294901760, %v200_v30 }
  0x29   :  { %246 = vmatpush.msra.mxu2 %v690_v1  ;;  %289 = vmatpush.msra.mxu3 %v680_v60 }
  0x2a   :  { %172 = vmatpush.msra.mxu1 %v171_v53  ;;  %95 = vmatpush.msra.mxu0 %v699_v12 }
  0x2b   :  { %249 = vmatpush.msra.mxu2 %v702_v21  ;;  %291 = vmatpush.msra.mxu3 %v699_v12 }
  0x2c   :  { %178 = vmatpush.msra.mxu1 %v177_v61  ;;  %97 = vmatpush.msra.mxu0 %v711_v34 }
  0x2d   :  { %252 = vmatpush.msra.mxu2 %v723_v40  ;;  %293 = vmatpush.msra.mxu3 %v711_v34 }
  0x2e   :  { %304 = vmatpush.msrb.mxu0 %v109_v22  ;;  %184 = vmatpush.msra.mxu1 %v183_v6 }
  0x2f   :  { %255 = vmatpush.msra.mxu2 %v734_v50  ;;  %297 = vmatmul.f32.vlgmr.msra.gmra.mxu3 %v100_v59 }
  0x30   :  { %308 = vmatpush.msrb.mxu0 %v115_v23  ;;  %190 = vmatpush.msra.mxu1 %v189_v29 }
  0x31   :  { %258 = vmatmul.f32.vlgmr.msra.gmra.mxu2 %v99_v42  ;;  %103 = vmatmul.f32.vlgmr.msra.gmra.mxu0 %v102_v38 }
  0x32   :  { %312 = vmatpush.msrb.mxu0 %v121_v24  ;;  %196 = vmatpush.msra.mxu1 %v195_v37 }
  0x34   :  { %316 = vmatpush.msrb.mxu0 %v127_v26  ;;  %202 = vmatpush.msra.mxu1 %v201_v43 }
  0x35   :  { %204 = vmatmul.f32.vlgmr.msra.gmra.mxu1 %v713_v35 }
  0x36   :  { %371 = vmatpush.msrb.mxu1 %v570_v3  ;;  %320 = vmatpush.msrb.mxu0 %v133_v27  ;;  %v456_v3 = vld [vmem:[%s816_s2] ss:$0 sm:$0xff]  ;;  %s543_s2 = smov [#allocation7]  }
  0x37   :  { %s438_s24 = sshll.u32 %s543_s2, 4  ;;  %s439_s24 = int_to_ptr.vmem [resolvable:$true] %s438_s24 }
  0x38   :  { %373 = vmatpush.msrb.mxu1 %v572_v4  ;;  %324 = vmatpush.msrb.mxu0 %v139_v39 }
  0x3a   :  { %375 = vmatpush.msrb.mxu1 %v574_v5  ;;  %328 = vmatpush.msrb.mxu0 %v145_v41 }
  0x3c   :  { %377 = vmatpush.msrb.mxu1 %v576_v9  ;;  %332 = vmatpush.msrb.mxu0 %v151_v48 }
  0x3e   :  { %379 = vmatpush.msrb.mxu1 %v578_v10  ;;  %336 = vmatpush.msrb.mxu0 %v157_v57 }
  0x40   :  { %381 = vmatpush.msrb.mxu1 %v580_v11  ;;  %340 = vmatpush.msrb.mxu0 %v163_v63 }
  0x42   :  { %383 = vmatpush.msrb.mxu1 %v592_v17  ;;  %344 = vmatpush.msrb.mxu0 %v169_v8 }
  0x44   :  { %385 = vmatpush.msrb.mxu1 %v601_v20  ;;  %348 = vmatpush.msrb.mxu0 %v175_v31 }
  0x46   :  { %387 = vmatpush.msrb.mxu1 %v627_v32  ;;  %352 = vmatpush.msrb.mxu0 %v181_v36 }
  0x48   :  { %389 = vmatpush.msrb.mxu1 %v646_v44  ;;  %356 = vmatpush.msrb.mxu0 %v187_v49 }
  0x4a   :  { %391 = vmatpush.msrb.mxu1 %v651_v46  ;;  %360 = vmatpush.msrb.mxu0 %v193_v56 }
  0x4c   :  { %393 = vmatpush.msrb.mxu1 %v663_v52  ;;  %364 = vmatpush.msrb.mxu0 %v199_v2 }
  0x4d   :  { %366 = vmatmul.f32.vlgmr.msrb.gmra.mxu0 %v713_v35 }
  0x4e   :  { %395 = vmatpush.msrb.mxu1 %v665_v54 }
  0x50   :  { %397 = vmatpush.msrb.mxu1 %v680_v60 }
  0x52   :  { %399 = vmatpush.msrb.mxu1 %v699_v12 }
  0x54   :  { %401 = vmatpush.msrb.mxu1 %v711_v34 }
  0x55   :  { %403 = vmatmul.f32.vlgmr.msrb.gmra.mxu1 %v713_v35 }
  0xae   :  { %v104_v4 = vpop.f32.mrf.mxu0 }
  0xaf   :  { %v105_v5 = vadd.f32 %v456_v3, %v104_v4 }
  0xb2   :  { %v205_v9 = vpop.f32.mrf.mxu1  ;;  %v298_v15 = vpop.f32.mrf.mxu3 }
  0xb3   :  { %v206_v10 = vadd.f32 %v205_v9, %v105_v5 }
  0xb4   :  { %v259_v11 = vpop.f32.mrf.mxu2 }
  0xb5   :  { %v260_v14 = vadd.f32 %v259_v11, %v206_v10 }
  0xb7   :  { %v299_v16 = vadd.f32 %v298_v15, %v260_v14 }
  0xca   :  { %v367_v17 = vpop.f32.mrf.mxu0 }
  0xcb   :  { %v368_v18 = vadd.f32 %v367_v17, %v299_v16 }
  0xd2   :  { %v404_v19 = vpop.f32.mrf.mxu1 }
  0xd3   :  { %v405_v20 = vadd.f32 %v404_v19, %v368_v18 }
  0xd5   :  { %v408_v22 = vsel %vm407_vm0, %v405_v20, -inf }
  0xd6   :  { %409 = vmax.xlane.f32.xlu0 %v408_v22 }
 0x149   :  { %v410_v23 = vpop.xlane.xlu0 %409 }
 0x14a   :  { %v411_v24 = vsub.f32 %v405_v20, %v410_v23 }
 0x14c   :  { %v412_v25 = vmul.f32 1.442695, %v411_v24 }
 0x14e   :  { %457 = vpow2.f32 %v412_v25 }
 0x154   :  { %v458_v26 = vpop.eup %457 }
 0x155   :  { %v414_v27 = vsel %vm407_vm0, %v458_v26, 0.0 }
 0x156   :  { %415 = vadd.xlane.f32.xlu0 %v414_v27 }
 0x1c9   :  { %v416_v28 = vpop.xlane.xlu0 %415 }
 0x1ca   :  { %459 = vrcp.f32 %v416_v28  ;;  %v428_v41 = vand.u32 2147483648, %v416_v28  ;;  %v426_v45 = vand.u32 2147483647, %v416_v28  ;;  %vm422_vm2 = vweird.f32 %v416_v28 }
 0x1cc   :  { %v429_v48 = vor.u32 1.1754944e-38, %v428_v41  ;;  %vm427_vm4 = vcmp.eq.f32.partialorder %v426_v45, 8.507059e+37 }
 0x1d0   :  { %v460_v32 = vpop.eup %459 }
 0x1d1   :  { %v418_v33 = vmul.f32 %v460_v32, %v416_v28  ;;  %vm423_vm1 = vweird.f32 %v460_v32 }
 0x1d2   :  { %vm424_vm3 = vmor %vm422_vm2, %vm423_vm1 }
 0x1d3   :  { %v419_v39 = vsub.f32 1.0, %v418_v33 }
 0x1d5   :  { %v420_v44 = vmul.f32 %v460_v32, %v419_v39 }
 0x1d7   :  { %v421_v46 = vadd.f32 %v460_v32, %v420_v44 }
 0x1d9   :  { %v425_v51 = vsel %vm424_vm3, %v460_v32, %v421_v46 }
 0x1da   :  { %v430_v52 = vsel %vm427_vm4, %v429_v48, %v425_v51 }
 0x1db   :  { %v431_v54 = vmul.f32 %v458_v26, %v430_v52 }
 0x1dd   :  { %432 = vst [vmem:[#allocation7] sm:$0x3f] %v431_v54 }
 0x1de   :  { %443 = dma.vmem_to_hbm [thread:$0]  %s439_s24, 128, %s441_s27, [#allocation4]  }
 0x1df   :  { %537 = dma.done.wait [#allocation4], 128  }
 0x1e0   :  { %538 = vsyncadd [#allocation4], 4294967168 }
 0x1e1   :  { %448 = vsyncpa [#allocation3], 1 }
 0x1e2   :  { %449 = vsyncpa [#allocation6], 1 }
 0x1e3   :  { %450 = vsyncpa [#allocation4], 1 }

</bundles_post_ra>
